<compile_context>
chip_gen: v7x
topology: tpu7x:2x2x1
jax: 0.10.0
libtpu: 0.0.40
codegen_flags: <defaults>
</compile_context>

<pallas_src>
import math
import numpy as np
import jax
import jax.numpy as jnp
from jax.experimental import pallas as pl
from jax.experimental.pallas import tpu as pltpu


# ----------------------------------------------------------------------------
# Trace-time helpers (pure numpy): Gaussian taps and reflect-padded band matrix.
# ----------------------------------------------------------------------------
def _gaussian_kernel1d(kernel_size: int, sigma: float) -> np.ndarray:
    """Matches torchvision._get_gaussian_kernel1d (float32)."""
    ksize_half = (kernel_size - 1) * 0.5
    x = np.linspace(-ksize_half, ksize_half, num=kernel_size, dtype=np.float32)
    pdf = np.exp(-0.5 * (x / np.float32(sigma)) ** 2)
    return (pdf / pdf.sum()).astype(np.float32)


def _band_matrix(n: int, taps: np.ndarray, pad: int) -> np.ndarray:
    """Banded matrix applying a 1-D cross-correlation with reflect padding.

    A[u, reflect(u + t - pad)] += taps[t]  so that  (A @ x)[u] == blur1d(x)[u].
    """
    if pad >= n:
        raise ValueError("reflect padding requires kernel_size // 2 < dim size")
    A = np.zeros((n, n), dtype=np.float32)
    for u in range(n):
        for t in range(len(taps)):
            src = u + t - pad
            if src < 0:
                src = -src
            elif src >= n:
                src = 2 * (n - 1) - src
            A[u, src] += taps[t]
    return A


# ----------------------------------------------------------------------------
# Generation-aware block sizing.
# ----------------------------------------------------------------------------
def _tpu_generation_params():
    """Returns (min_grid_steps, block_budget_bytes, vmem_limit_bytes) per TPU gen."""
    kind = ""
    try:
        kind = jax.devices()[0].device_kind.lower()
    except Exception:  # pragma: no cover - defensive: fall through to defaults
        pass
    if "v7" in kind:
        # 2 TensorCores/chip, 64 MiB physical VMEM (32 MiB default scoped):
        # prefer >=2 grid steps so ("parallel",) shards across the two TCs.
        return 2, 24 << 20, 32 << 20
    if "v5 lite" in kind or "v5lite" in kind or "v5e" in kind:
        # Single TC, 16 MiB default scoped VMEM: single grid step, modest blocks.
        return 1, 12 << 20, 32 << 20
    # v6e / default: single TC, 128 MiB VMEM -> one big grid step.
    return 1, 48 << 20, 64 << 20


def _pick_plane_block(num_planes: int, plane_bytes: int, resident_bytes: int,
                      block_budget_bytes: int, min_steps: int) -> int:
    """Largest divisor B of num_planes that (a) is sublane-aligned (B % 8 == 0)
    or covers all planes, (b) keeps double-buffered in+out blocks plus the
    resident Kronecker matrix within the VMEM budget, and (c) prefers keeping
    >= min_steps grid steps (for multi-TensorCore chips)."""
    def shape_ok(b):
        return (b % 8 == 0) or (b == num_planes)

    def fits(b):
        # in block + out block, each double-buffered, plus the resident A
        # matrix (also double-buffered as an input).
        return 2 * (2 * b * plane_bytes) + 2 * resident_bytes <= block_budget_bytes

    candidates = [b for b in range(1, num_planes + 1)
                  if num_planes % b == 0 and shape_ok(b) and fits(b)]
    if not candidates:
        return 1  # tiny fallback; never hit for the shapes exercised here
    preferred = [b for b in candidates if num_planes // b >= min_steps]
    return max(preferred) if preferred else max(candidates)


# ----------------------------------------------------------------------------
# Pallas kernel: one lane-dense MXU matmul per grid step.
# ----------------------------------------------------------------------------
def _blur_kernel(a_ref, x_ref, o_ref):
    # a_ref: (HW, HW) bf16 Kronecker blur matrix, resident across the grid.
    # x_ref / o_ref: (B, HW) lane-dense plane blocks.
    x = x_ref[...].astype(jnp.bfloat16)
    out = jax.lax.dot_general(
        x, a_ref[...],
        dimension_numbers=(((1,), (1,)), ((), ())),   # out[b, u] = sum_v x[b,v] A[u,v]
        preferred_element_type=jnp.float32,
    )
    o_ref[...] = out.astype(o_ref.dtype)


def make_gaussian_blur(kernel_size, sigma_range=(0.1, 2.0), *, rng_key=None):
    """Returns (blur_fn, sigma, (kx, ky)) for [..., C, H, W] inputs."""
    if isinstance(kernel_size, (int, np.integer)):
        kernel_size = (int(kernel_size), int(kernel_size))
    kx_size, ky_size = kernel_size
    for ks in (kx_size, ky_size):
        if ks <= 0 or ks % 2 == 0:
            raise ValueError("Kernel size value should be an odd and positive number.")

    # GaussianBlur.get_params: uniform sample in [sigma_min, sigma_max].
    if rng_key is None:
        rng_key = jax.random.PRNGKey(0)
    sigma = float(
        jax.random.uniform(
            rng_key, (), minval=sigma_range[0], maxval=sigma_range[1], dtype=jnp.float32
        )
    )

    kx = _gaussian_kernel1d(kx_size, sigma)  # taps along W
    ky = _gaussian_kernel1d(ky_size, sigma)  # taps along H
    pad_w = kx_size // 2
    pad_h = ky_size // 2

    def blur(x):
        # x: [..., H, W]; all leading dims (batch, channels, ...) are flattened
        # into independent planes (the blur is depthwise / per-channel).
        if x.ndim < 2:
            raise ValueError("Input must have at least 2 dims [..., H, W].")
        *lead, H, W = x.shape
        if pad_h >= H or pad_w >= W:
            raise ValueError("Image too small for requested kernel size (reflect pad).")
        HW = H * W
        if HW > 4096:
            # TODO(synk): halo-tiled separable-tap path for large images.
            raise NotImplementedError(
                "Dense Kronecker blur path is only intended for small images (H*W <= 4096)."
            )

        # Trace-time: reflect boundary + separable taps folded into one matrix.
        A_h = _band_matrix(H, ky, pad_h)                  # (H, H)
        A_w = _band_matrix(W, kx, pad_w)                  # (W, W)
        A = jnp.asarray(np.kron(A_h, A_w), dtype=jnp.bfloat16)  # (HW, HW)

        NC = int(np.prod(lead)) if lead else 1
        x_flat = x.reshape(NC, HW)                        # lane-dense layout

        min_steps, block_budget, vmem_limit = _tpu_generation_params()
        B = _pick_plane_block(
            NC,
            plane_bytes=HW * x.dtype.itemsize,
            resident_bytes=A.size * A.dtype.itemsize,
            block_budget_bytes=block_budget,
            min_steps=min_steps,
        )
        grid = (NC // B,)

        out_flat = pl.pallas_call(
            _blur_kernel,
            out_shape=jax.ShapeDtypeStruct((NC, HW), x.dtype),
            grid=grid,
            in_specs=[
                pl.BlockSpec((HW, HW), lambda i: (0, 0)),   # A, resident in VMEM
                pl.BlockSpec((B, HW), lambda i: (i, 0)),    # B planes per step
            ],
            out_specs=pl.BlockSpec((B, HW), lambda i: (i, 0)),
            compiler_params=pltpu.CompilerParams(
                dimension_semantics=("parallel",),
                vmem_limit_bytes=vmem_limit,
            ),
        )(A, x_flat)

        return out_flat.reshape(x.shape)

    return jax.jit(blur), sigma, (kx, ky)


# ----------------------------------------------------------------------------
# Pure-JAX reference (reflect pad + separable taps) for the correctness check.
# ----------------------------------------------------------------------------
def _reference_blur(x, kx, ky, pad_w, pad_h):
    xp = jnp.pad(x, ((0, 0), (0, 0), (pad_h, pad_h), (pad_w, pad_w)), mode="reflect")
    N, C, H, W = x.shape
    out = jnp.zeros(x.shape, dtype=jnp.float32)
    for i in range(ky.shape[0]):
        for j in range(kx.shape[0]):
            out = out + ky[i] * kx[j] * xp[:, :, i:i + H, j:j + W].astype(jnp.float32)
    return out.astype(x.dtype)


if __name__ == "__main__":
    key = jax.random.PRNGKey(0)
    k_img, k_sigma = jax.random.split(key)

    # Small [N, C, H, W] input consistent with the module's [..., C, H, W] contract.
    N, C, H, W = 2, 4, 16, 16
    x = jax.random.normal(k_img, (N, C, H, W), dtype=jnp.float32)

    kernel_size = 5
    blur_fn, sigma, (kx, ky) = make_gaussian_blur(
        kernel_size, (0.1, 2.0), rng_key=k_sigma
    )

    y = jax.block_until_ready(blur_fn(x))

    # Correctness check vs. pure-JAX f32 reference of the same math.
    # Tolerance is bf16-level because the kernel uses bf16 MXU operands
    # (f32 accumulation); Gaussian taps sum to 1 so error stays ~1e-2.
    y_ref = _reference_blur(
        x, jnp.asarray(kx), jnp.asarray(ky), kernel_size // 2, kernel_size // 2
    )
    np.testing.assert_allclose(np.asarray(y), np.asarray(y_ref), rtol=3e-2, atol=3e-2)

    assert y.shape == (N, C, H, W) and y.dtype == x.dtype
    print("KERNEL_OK")
</pallas_src>

<mosaic_0001>
module attributes {stable_mosaic.version = 11 : i64} {
  func.func @_blur_kernel(%arg0: i32, %arg1: memref<256x256xbf16, #tpu.memory_space<vmem>>, %arg2: memref<8x256xf32, #tpu.memory_space<vmem>>, %arg3: memref<8x256xf32, #tpu.memory_space<vmem>>) attributes {dimension_semantics = [#tpu.dimension_semantics<parallel>], iteration_bounds = array<i64: 1>, scalar_prefetch = 0 : i64, scratch_operands = 0 : i64, tpu.core_type = #tpu.core_type<tc>, window_params = [{pipeline_mode = #tpu.pipeline_mode<synchronous>, transform_indices = @transform_0, window_bounds = array<i64: 256, 256>}, {transform_indices = @transform_1, window_bounds = array<i64: 8, 256>}, {transform_indices = @transform_2, window_bounds = array<i64: 8, 256>}]} {
    %c0 = arith.constant 0 : index
    %c0_0 = arith.constant 0 : index
    %0 = vector.load %arg2[%c0, %c0_0] : memref<8x256xf32, #tpu.memory_space<vmem>>, vector<8x256xf32>
    %1 = arith.truncf %0 : vector<8x256xf32> to vector<8x256xbf16>
    %c0_1 = arith.constant 0 : index
    %c0_2 = arith.constant 0 : index
    %2 = vector.load %arg1[%c0_1, %c0_2] : memref<256x256xbf16, #tpu.memory_space<vmem>>, vector<256x256xbf16>
    %cst = arith.constant dense<0.000000e+00> : vector<8x256xf32>
    %3 = tpu.matmul %1, %2, %cst {dimension_numbers = #tpu.dot_dimension_numbers<[1], [1], [0], [0], [0, 0, 1, 0], [], []>} : vector<8x256xbf16>, vector<256x256xbf16>, vector<8x256xf32> -> vector<8x256xf32>
    %c0_3 = arith.constant 0 : index
    %c0_4 = arith.constant 0 : index
    %4 = vector.load %arg3[%c0_3, %c0_4] : memref<8x256xf32, #tpu.memory_space<vmem>>, vector<8x256xf32>
    tpu.vector_store %arg3[%c0_3, %c0_4], %3 {strides = array<i32>} : memref<8x256xf32, #tpu.memory_space<vmem>>, vector<8x256xf32>,
    return
  }
  func.func @transform_0(%arg0: i32) -> (i32, i32) {
    %c0_i32 = arith.constant 0 : i32
    %c0_i32_0 = arith.constant 0 : i32
    %c0_i32_1 = arith.constant 0 : i32
    return %c0_i32, %c0_i32_0 : i32, i32
  }
  func.func @transform_1(%arg0: i32) -> (i32, i32) {
    %c0_i32 = arith.constant 0 : i32
    %c0_i32_0 = arith.constant 0 : i32
    return %arg0, %c0_i32 : i32, i32
  }
  func.func @transform_2(%arg0: i32) -> (i32, i32) {
    %c0_i32 = arith.constant 0 : i32
    %c0_i32_0 = arith.constant 0 : i32
    return %arg0, %c0_i32 : i32, i32
  }
}

</mosaic_0001>

<bundles_post_ra>
// kernel: blur.1
= control target key start
LH: loop header
LB: loop body
LE: loop exit
PB: predicated region body
PF: predicated region fallthrough
CT: control target
= control target key end

     0   :  { %7 = vsyncpa [#allocation3], 0  ;;  %s506_s0 = inlined_call_operand.hbm [shape: bf16[256,256], index: 0, kind: input, shape index: {}]   ;;  %s507_s1 = inlined_call_operand.hbm [shape: f32[8,256], index: 1, kind: input, shape index: {}]   ;;  %s508_s2 = inlined_call_operand.hbm [shape: f32[8,256], index: 2, kind: output, shape index: {}]  }
   0x1   :  { %8 = vsyncpa [#allocation6], 0 }
   0x2   :  { %9 = vsyncpa [#allocation4], 0  ;;  %s450_s9 = smov [#allocation2]   ;;  %s378_s13 = scalar_lea.hbm %s506_s0, 4096 }
   0x3   :  { %s15_s10 = sshll.u32 %s450_s9, 4  ;;  %p379_p0 = scmp.ne.s32.totalorder %s506_s0, %s378_s13  ;;  %s16_s10 = int_to_ptr.vmem [resolvable:$true] %s15_s10 }
   0x4   :  { %p382_p1 = scmp.lt.u32.totalorder %s378_s13, %s506_s0 }
   0x6   :  { %p384_p2 = pnand %p382_p1, %p379_p0 }
   0x8   :  { %387 = shalt.err (!%p384_p2)
}
   0x9   :  { %s388_s18 = scalar_lea.vmem %s16_s10, 4096  ;;  %p393_p4 = scmp.lt.s32.totalorder %s16_s10, %s16_s10 }
   0xa   :  { %p389_p3 = scmp.ne.s32.totalorder %s16_s10, %s388_s18  ;;  %p394_p5 = scmp.lt.s32.totalorder %s388_s18, %s388_s18 }
   0xc   :  { %p395_p6 = por %p394_p5, %p393_p4 }
   0xe   :  { %p396_p7 = pnand %p395_p6, %p389_p3 }
  0x10   :  { %399 = shalt.err (!%p396_p7)
}
  0x11   :  { %s451_s19 = smov 128   ;;  %s452_s20 = smov 8  }
  0x12   :  { %21 = dma.hbm_to_vmem [thread:$0]  %s506_s0, 4096, %s16_s10, [#allocation3], %s451_s19, %s451_s19, %s452_s20  }
  0x13   :  { %s453_s23 = smov [#allocation5]   ;;  %s400_s27 = scalar_lea.hbm %s507_s1, 256 }
  0x14   :  { %s28_s24 = sshll.u32 %s453_s23, 4  ;;  %p401_p8 = scmp.ne.s32.totalorder %s507_s1, %s400_s27  ;;  %s29_s24 = int_to_ptr.vmem [resolvable:$true] %s28_s24 }
  0x15   :  { %p404_p9 = scmp.lt.u32.totalorder %s400_s27, %s507_s1 }
  0x17   :  { %p406_p10 = pnand %p404_p9, %p401_p8 }
  0x19   :  { %409 = shalt.err (!%p406_p10)
}
  0x1a   :  { %s410_s4 = scalar_lea.vmem %s29_s24, 256  ;;  %p415_p12 = scmp.lt.s32.totalorder %s29_s24, %s29_s24 }
  0x1b   :  { %p411_p11 = scmp.ne.s32.totalorder %s29_s24, %s410_s4  ;;  %p416_p13 = scmp.lt.s32.totalorder %s410_s4, %s410_s4 }
  0x1d   :  { %p417_p0 = por %p416_p13, %p415_p12 }
  0x1f   :  { %p418_p1 = pnand %p417_p0, %p411_p11 }
  0x21   :  { %421 = shalt.err (!%p418_p1)
}
  0x22   :  { %31 = dma.hbm_to_vmem [thread:$0]  %s507_s1, 256, %s29_s24, [#allocation6]  }
  0x23   :  { %444 = dma.done.wait [#allocation3], 4096  }
  0x24   :  { %445 = vsyncadd [#allocation3], 4294963200 }
  0x25   :  { %446 = dma.done.wait [#allocation6], 256  }
  0x26   :  { %447 = vsyncadd [#allocation6], 4294967040  ;;  %v330_v0 = vld [vmem:[#allocation2 + $0x4] ss:$8 sps:$4 sm:$0xff]   ;;  %v332_v1 = vld [vmem:[#allocation2] ss:$8 sps:$4 sm:$0xff]  }
  0x27   :  { %234 = vmatprep.subr.bf16.mxu0 %v330_v0  ;;  %v333_v2 = vld [vmem:[#allocation2 + $0x14] ss:$8 sps:$4 sm:$0xff]   ;;  %v335_v3 = vld [vmem:[#allocation2 + $0x10] ss:$8 sps:$4 sm:$0xff]   ;;  %v336_v4 = vld [vmem:[#allocation2 + $0x24] ss:$8 sps:$4 sm:$0xff]  }
  0x28   :  { %235 = vmatpush1.bf16.xpose.msra.mxu0 %v332_v1  ;;  %v338_v5 = vld [vmem:[#allocation2 + $0x20] ss:$8 sps:$4 sm:$0xff]   ;;  %v339_v6 = vld [vmem:[#allocation2 + $0x34] ss:$8 sps:$4 sm:$0xff]   ;;  %v341_v9 = vld [vmem:[#allocation2 + $0x30] ss:$8 sps:$4 sm:$0xff]  }
  0x29   :  { %236 = vmatprep.subr.bf16.mxu0 %v333_v2  ;;  %v39_v7 = vld [vmem:[#allocation5 + $0x8] sm:$0xff]  ;;  %v345_v12 = vld [vmem:[#allocation2 + $0x54] ss:$8 sps:$4 sm:$0xff]   ;;  %v347_v13 = vld [vmem:[#allocation2 + $0x50] ss:$8 sps:$4 sm:$0xff]   ;;  %s454_s1 = smov [#allocation7]  }
  0x2a   :  { %v41_v8 = vpack.c.bf16 %v39_v7, %v39_v7  ;;  %v342_v10 = vld [vmem:[#allocation2 + $0x44] ss:$8 sps:$4 sm:$0xff]   ;;  %v344_v11 = vld [vmem:[#allocation2 + $0x40] ss:$8 sps:$4 sm:$0xff]   ;;  %v351_v16 = vld [vmem:[#allocation2 + $0x74] ss:$8 sps:$4 sm:$0xff]  }
  0x2b   :  { %v348_v14 = vld [vmem:[#allocation2 + $0x64] ss:$8 sps:$4 sm:$0xff]   ;;  %v350_v15 = vld [vmem:[#allocation2 + $0x60] ss:$8 sps:$4 sm:$0xff]   ;;  %v353_v17 = vld [vmem:[#allocation2 + $0x70] ss:$8 sps:$4 sm:$0xff]  }
  0x2c   :  { %266 = vmatprep.mubr.bf16.mxu0 %v41_v8  ;;  %v354_v18 = vld [vmem:[#allocation2 + $0x84] ss:$8 sps:$4 sm:$0xff]   ;;  %v356_v19 = vld [vmem:[#allocation2 + $0x80] ss:$8 sps:$4 sm:$0xff]   ;;  %v357_v20 = vld [vmem:[#allocation2 + $0x94] ss:$8 sps:$4 sm:$0xff]  }
  0x2d   :  { %v359_v21 = vld [vmem:[#allocation2 + $0x90] ss:$8 sps:$4 sm:$0xff]   ;;  %v360_v22 = vld [vmem:[#allocation2 + $0xa4] ss:$8 sps:$4 sm:$0xff]   ;;  %v362_v23 = vld [vmem:[#allocation2 + $0xa0] ss:$8 sps:$4 sm:$0xff]  }
  0x2e   :  { %v363_v24 = vld [vmem:[#allocation2 + $0xb4] ss:$8 sps:$4 sm:$0xff]   ;;  %v365_v25 = vld [vmem:[#allocation2 + $0xb0] ss:$8 sps:$4 sm:$0xff]   ;;  %v366_v26 = vld [vmem:[#allocation2 + $0xc4] ss:$8 sps:$4 sm:$0xff]  }
  0x2f   :  { %v368_v27 = vld [vmem:[#allocation2 + $0xc0] ss:$8 sps:$4 sm:$0xff]   ;;  %v369_v28 = vld [vmem:[#allocation2 + $0xd4] ss:$8 sps:$4 sm:$0xff]   ;;  %v371_v29 = vld [vmem:[#allocation2 + $0xd0] ss:$8 sps:$4 sm:$0xff]  }
  0x30   :  { %237 = vmatpush1.bf16.xpose.msra.mxu0 %v335_v3  ;;  %v372_v30 = vld [vmem:[#allocation2 + $0xe4] ss:$8 sps:$4 sm:$0xff]   ;;  %v374_v31 = vld [vmem:[#allocation2 + $0xe0] ss:$8 sps:$4 sm:$0xff]   ;;  %v375_v32 = vld [vmem:[#allocation2 + $0xf4] ss:$8 sps:$4 sm:$0xff]  }
  0x31   :  { %238 = vmatprep.subr.bf16.mxu0 %v336_v4  ;;  %v377_v33 = vld [vmem:[#allocation2 + $0xf0] ss:$8 sps:$4 sm:$0xff]   ;;  %v38_v34 = vld [vmem:[#allocation5] sm:$0xff]  ;;  %s283_s6 = sshll.u32 %s454_s1, 4  ;;  %s284_s6 = int_to_ptr.vmem [resolvable:$true] %s283_s6 }
  0x32   :  { %v40_v35 = vpack.c.bf16 %v38_v34, %v38_v34  ;;  %s422_s7 = scalar_lea.vmem %s284_s6, 256  ;;  %p427_p3 = scmp.lt.s32.totalorder %s284_s6, %s284_s6 }
  0x33   :  { %p423_p2 = scmp.ne.s32.totalorder %s284_s6, %s422_s7  ;;  %p428_p4 = scmp.lt.s32.totalorder %s422_s7, %s422_s7 }
  0x35   :  { %p429_p5 = por %p428_p4, %p427_p3 }
  0x37   :  { %p430_p6 = pnand %p429_p5, %p423_p2 }
  0x38   :  { %239 = vmatpush1.bf16.xpose.msra.mxu0 %v338_v5 }
  0x39   :  { %240 = vmatprep.subr.bf16.mxu0 %v339_v6 }
  0x40   :  { %241 = vmatpush1.bf16.xpose.msra.mxu0 %v341_v9 }
  0x41   :  { %242 = vmatprep.subr.bf16.mxu0 %v342_v10 }
  0x48   :  { %243 = vmatpush1.bf16.xpose.msra.mxu0 %v344_v11 }
  0x49   :  { %244 = vmatprep.subr.bf16.mxu0 %v345_v12 }
  0x50   :  { %245 = vmatpush1.bf16.xpose.msra.mxu0 %v347_v13 }
  0x51   :  { %246 = vmatprep.subr.bf16.mxu0 %v348_v14 }
  0x58   :  { %247 = vmatpush1.bf16.xpose.msra.mxu0 %v350_v15 }
  0x59   :  { %248 = vmatprep.subr.bf16.mxu0 %v351_v16 }
  0x60   :  { %249 = vmatpush1.bf16.xpose.msra.mxu0 %v353_v17 }
  0x61   :  { %250 = vmatprep.subr.bf16.mxu0 %v354_v18 }
  0x68   :  { %251 = vmatpush1.bf16.xpose.msra.mxu0 %v356_v19 }
  0x69   :  { %252 = vmatprep.subr.bf16.mxu0 %v357_v20 }
  0x70   :  { %253 = vmatpush1.bf16.xpose.msra.mxu0 %v359_v21 }
  0x71   :  { %254 = vmatprep.subr.bf16.mxu0 %v360_v22 }
  0x78   :  { %255 = vmatpush1.bf16.xpose.msra.mxu0 %v362_v23 }
  0x79   :  { %256 = vmatprep.subr.bf16.mxu0 %v363_v24 }
  0x80   :  { %257 = vmatpush1.bf16.xpose.msra.mxu0 %v365_v25 }
  0x81   :  { %258 = vmatprep.subr.bf16.mxu0 %v366_v26 }
  0x88   :  { %259 = vmatpush1.bf16.xpose.msra.mxu0 %v368_v27 }
  0x89   :  { %260 = vmatprep.subr.bf16.mxu0 %v369_v28 }
  0x90   :  { %261 = vmatpush1.bf16.xpose.msra.mxu0 %v371_v29 }
  0x91   :  { %262 = vmatprep.subr.bf16.mxu0 %v372_v30 }
  0x98   :  { %263 = vmatpush1.bf16.xpose.msra.mxu0 %v374_v31 }
  0x99   :  { %264 = vmatprep.subr.bf16.mxu0 %v375_v32 }
  0xa0   :  { %265 = vmatpush1.bf16.xpose.msra.mxu0 %v377_v33 }
  0xa7   :  { %267 = vmatmul.mubr.bf16.vlgmr.msra.gmra.mrb[0].mxu0 %v40_v35 }
 0x17a   :  { %v268_v36 = vpop.f32.mrb[0].mxu0 }
 0x17b   :  { %275 = vst [vmem:[#allocation7] sm:$0xff] %v268_v36  ;;  %v270_v37 = vpop.f32.mrb[1].mxu0 }
 0x17c   :  { %276 = vst [vmem:[#allocation7 + $0x8] sm:$0xff] %v270_v37  ;;  %v272_v38 = vpop.f32.mrb[2].mxu0 }
 0x17d   :  { %v273_v39 = vpop.f32.mrb[3].mxu0 }
 0x17e   :  { %433 = shalt.err (!%p430_p6)
}
 0x17f   :  { %s434_s10 = scalar_lea.hbm %s508_s2, 256 }
 0x180   :  { %p435_p7 = scmp.ne.s32.totalorder %s508_s2, %s434_s10  ;;  %p438_p8 = scmp.lt.u32.totalorder %s434_s10, %s508_s2 }
 0x182   :  { %p440_p9 = pnand %p438_p8, %p435_p7 }
 0x184   :  { %443 = shalt.err (!%p440_p9)
}
 0x185   :  { %286 = dma.vmem_to_hbm [thread:$0]  %s284_s6, 256, %s508_s2, [#allocation4]  }
 0x186   :  { %448 = dma.done.wait [#allocation4], 256  }
 0x187   :  { %449 = vsyncadd [#allocation4], 4294967040 }
 0x188   :  { %290 = vsyncpa [#allocation3], 1 }
 0x189   :  { %291 = vsyncpa [#allocation6], 1 }
 0x18a   :  { %292 = vsyncpa [#allocation4], 1 }

</bundles_post_ra>
